<compile_context>
chip_gen: v7x
topology: tpu7x:2x2x1
jax: 0.10.0
libtpu: 0.0.40
codegen_flags: <defaults>
</compile_context>

<pallas_src>
import jax
import jax.numpy as jnp
from jax.experimental import pallas as pl
from jax.experimental.pallas import tpu as pltpu


def _chunk_slices(length, itemsize, max_chunks=4, min_chunk_bytes=128 * 1024):
    """Static split of a contiguous run of `length` elements into <= max_chunks pieces."""
    n = max(1, min(max_chunks, (length * itemsize) // min_chunk_bytes))
    if n <= 1:
        return [(0, length)]
    base = -(-length // n)            # ceil division
    base = -(-base // 128) * 128      # round chunk size up to a 128-element multiple
    slices = []
    start = 0
    while start < length:
        size = min(base, length - start)
        slices.append((start, size))
        start += size
    return slices


def _make_concat_kernel(n_rows, chunks_a, chunks_b, c1hw):
    """Build the DMA-only concat kernel for static shapes/chunking."""
    n_per_row = len(chunks_a) + len(chunks_b)

    def kernel(a_hbm, b_hbm, o_hbm, sem):
        # a_hbm: (N, C1*H*W), b_hbm: (N, C2*H*W), o_hbm: (N, (C1+C2)*H*W); all HBM refs.
        copies = []
        for row in range(n_rows):
            si = row * n_per_row
            # First input -> output columns [0, c1hw)
            for (start, size) in chunks_a:
                cp = pltpu.make_async_copy(
                    a_hbm.at[row, pl.ds(start, size)],
                    o_hbm.at[row, pl.ds(start, size)],
                    sem.at[si],
                )
                cp.start()
                copies.append(cp)
                si += 1
            # Second input -> output columns [c1hw, c1hw + c2hw)
            for (start, size) in chunks_b:
                cp = pltpu.make_async_copy(
                    b_hbm.at[row, pl.ds(start, size)],
                    o_hbm.at[row, pl.ds(c1hw + start, size)],
                    sem.at[si],
                )
                cp.start()
                copies.append(cp)
                si += 1
        # All DMAs are in flight before the first wait.
        for cp in copies:
            cp.wait()

    return kernel, n_rows * n_per_row


def cat_channels(a, b):
    """Equivalent of torch.cat([a, b], dim=1) for NCHW arrays."""
    assert a.ndim == 4 and b.ndim == 4
    assert a.shape[0] == b.shape[0] and a.shape[2:] == b.shape[2:]
    assert a.dtype == b.dtype
    n, c1, h, w = a.shape
    c2 = b.shape[1]
    c1hw, c2hw = c1 * h * w, c2 * h * w
    itemsize = jnp.dtype(a.dtype).itemsize

    # Contiguous views: per-batch channel blocks are contiguous in NCHW, so concat along
    # dim 1 is exactly a column-block placement in (N, C*H*W). Reshape is free (no copy).
    a_flat = a.reshape(n, c1hw)
    b_flat = b.reshape(n, c2hw)

    chunks_a = _chunk_slices(c1hw, itemsize)
    chunks_b = _chunk_slices(c2hw, itemsize)
    kernel, n_dmas = _make_concat_kernel(n, chunks_a, chunks_b, c1hw)

    out_elems = c1hw + c2hw
    out_bytes = n * out_elems * itemsize

    out_flat = pl.pallas_call(
        kernel,
        out_shape=jax.ShapeDtypeStruct((n, out_elems), a.dtype),
        in_specs=[
            pl.BlockSpec(memory_space=pl.ANY),   # keep in HBM, no auto-DMA
            pl.BlockSpec(memory_space=pl.ANY),
        ],
        out_specs=pl.BlockSpec(memory_space=pl.ANY),
        scratch_shapes=[pltpu.SemaphoreType.DMA((n_dmas,))],
        # Advisory cost: one full read + one full write of the output-sized data.
        cost_estimate=pl.CostEstimate(
            flops=0, transcendentals=0, bytes_accessed=2 * out_bytes
        ),
    )(a_flat, b_flat)

    return out_flat.reshape(n, c1 + c2, h, w)


if __name__ == "__main__":
    key = jax.random.PRNGKey(0)
    k1, k2, k3, k4 = jax.random.split(key, 4)

    # Small-shape check (batched, exercises the per-row loop; rows too small to chunk).
    a_small = jax.random.normal(k1, (2, 8, 16, 16), dtype=jnp.float32)
    b_small = jax.random.normal(k2, (2, 8, 16, 16), dtype=jnp.float32)
    out_small = jax.block_until_ready(cat_channels(a_small, b_small))
    ref_small = jnp.concatenate([a_small, b_small], axis=1)
    assert out_small.shape == (2, 16, 16, 16)
    assert bool(jnp.array_equal(out_small, ref_small))

    # Module's actual shape (1, 64, 54, 54): exercises the 4-way chunked DMAs per input.
    x14 = jax.random.normal(k3, (1, 64, 54, 54), dtype=jnp.float32)
    x16 = jax.random.normal(k4, (1, 64, 54, 54), dtype=jnp.float32)
    out = jax.block_until_ready(cat_channels(x14, x16))
    ref = jnp.concatenate([x14, x16], axis=1)
    assert out.shape == (1, 128, 54, 54)
    assert out.dtype == jnp.float32
    assert bool(jnp.array_equal(out, ref))

    print("KERNEL_OK")
</pallas_src>

<mosaic_0001>
module attributes {stable_mosaic.version = 11 : i64} {
  func.func @kernel(%arg0: memref<2x2048xf32, #tpu.memory_space<any>>, %arg1: memref<2x2048xf32, #tpu.memory_space<any>>, %arg2: memref<2x4096xf32, #tpu.memory_space<any>>, %arg3: memref<4x!tpu.dma_semaphore, #tpu.memory_space<semaphore_mem>>) attributes {dimension_semantics = [], scalar_prefetch = 0 : i64, scratch_operands = 1 : i64, tpu.core_type = #tpu.core_type<tc>} {
    %c0_i32 = arith.constant 0 : i32
    %c0_i32_0 = arith.constant 0 : i32
    %c0_i32_1 = arith.constant 0 : i32
    %c0_i32_2 = arith.constant 0 : i32
    %0 = tpu.memref_slice %arg0[%c0_i32, %c0_i32_2] : memref<2x2048xf32, #tpu.memory_space<any>> -> memref<1x2048xf32, #tpu.memory_space<any>>
    %1 = tpu.memref_squeeze %0 : memref<1x2048xf32, #tpu.memory_space<any>> -> memref<2048xf32, #tpu.memory_space<any>>
    %c0_i32_3 = arith.constant 0 : i32
    %2 = tpu.memref_slice %arg2[%c0_i32_0, %c0_i32_3] : memref<2x4096xf32, #tpu.memory_space<any>> -> memref<1x2048xf32, #tpu.memory_space<any>>
    %3 = tpu.memref_squeeze %2 : memref<1x2048xf32, #tpu.memory_space<any>> -> memref<2048xf32, #tpu.memory_space<any>>
    %4 = tpu.memref_slice %arg3[%c0_i32_1] : memref<4x!tpu.dma_semaphore, #tpu.memory_space<semaphore_mem>> -> memref<1x!tpu.dma_semaphore, #tpu.memory_space<semaphore_mem>>
    %5 = tpu.memref_squeeze %4 : memref<1x!tpu.dma_semaphore, #tpu.memory_space<semaphore_mem>> -> memref<!tpu.dma_semaphore, #tpu.memory_space<semaphore_mem>>
    tpu.enqueue_dma source(%1 : memref<2048xf32, #tpu.memory_space<any>>) target(%3 : memref<2048xf32, #tpu.memory_space<any>>) target_semaphore(%5 : memref<!tpu.dma_semaphore, #tpu.memory_space<semaphore_mem>>)
    %c0_i32_4 = arith.constant 0 : i32
    %c0_i32_5 = arith.constant 0 : i32
    %c1_i32 = arith.constant 1 : i32
    %c0_i32_6 = arith.constant 0 : i32
    %6 = tpu.memref_slice %arg1[%c0_i32_4, %c0_i32_6] : memref<2x2048xf32, #tpu.memory_space<any>> -> memref<1x2048xf32, #tpu.memory_space<any>>
    %7 = tpu.memref_squeeze %6 : memref<1x2048xf32, #tpu.memory_space<any>> -> memref<2048xf32, #tpu.memory_space<any>>
    %c2048_i32 = arith.constant 2048 : i32
    %8 = tpu.memref_slice %arg2[%c0_i32_5, %c2048_i32] : memref<2x4096xf32, #tpu.memory_space<any>> -> memref<1x2048xf32, #tpu.memory_space<any>>
    %9 = tpu.memref_squeeze %8 : memref<1x2048xf32, #tpu.memory_space<any>> -> memref<2048xf32, #tpu.memory_space<any>>
    %10 = tpu.memref_slice %arg3[%c1_i32] : memref<4x!tpu.dma_semaphore, #tpu.memory_space<semaphore_mem>> -> memref<1x!tpu.dma_semaphore, #tpu.memory_space<semaphore_mem>>
    %11 = tpu.memref_squeeze %10 : memref<1x!tpu.dma_semaphore, #tpu.memory_space<semaphore_mem>> -> memref<!tpu.dma_semaphore, #tpu.memory_space<semaphore_mem>>
    tpu.enqueue_dma source(%7 : memref<2048xf32, #tpu.memory_space<any>>) target(%9 : memref<2048xf32, #tpu.memory_space<any>>) target_semaphore(%11 : memref<!tpu.dma_semaphore, #tpu.memory_space<semaphore_mem>>)
    %c1_i32_7 = arith.constant 1 : i32
    %c1_i32_8 = arith.constant 1 : i32
    %c2_i32 = arith.constant 2 : i32
    %c0_i32_9 = arith.constant 0 : i32
    %12 = tpu.memref_slice %arg0[%c1_i32_7, %c0_i32_9] : memref<2x2048xf32, #tpu.memory_space<any>> -> memref<1x2048xf32, #tpu.memory_space<any>>
    %13 = tpu.memref_squeeze %12 : memref<1x2048xf32, #tpu.memory_space<any>> -> memref<2048xf32, #tpu.memory_space<any>>
    %c0_i32_10 = arith.constant 0 : i32
    %14 = tpu.memref_slice %arg2[%c1_i32_8, %c0_i32_10] : memref<2x4096xf32, #tpu.memory_space<any>> -> memref<1x2048xf32, #tpu.memory_space<any>>
    %15 = tpu.memref_squeeze %14 : memref<1x2048xf32, #tpu.memory_space<any>> -> memref<2048xf32, #tpu.memory_space<any>>
    %16 = tpu.memref_slice %arg3[%c2_i32] : memref<4x!tpu.dma_semaphore, #tpu.memory_space<semaphore_mem>> -> memref<1x!tpu.dma_semaphore, #tpu.memory_space<semaphore_mem>>
    %17 = tpu.memref_squeeze %16 : memref<1x!tpu.dma_semaphore, #tpu.memory_space<semaphore_mem>> -> memref<!tpu.dma_semaphore, #tpu.memory_space<semaphore_mem>>
    tpu.enqueue_dma source(%13 : memref<2048xf32, #tpu.memory_space<any>>) target(%15 : memref<2048xf32, #tpu.memory_space<any>>) target_semaphore(%17 : memref<!tpu.dma_semaphore, #tpu.memory_space<semaphore_mem>>)
    %c1_i32_11 = arith.constant 1 : i32
    %c1_i32_12 = arith.constant 1 : i32
    %c3_i32 = arith.constant 3 : i32
    %c0_i32_13 = arith.constant 0 : i32
    %18 = tpu.memref_slice %arg1[%c1_i32_11, %c0_i32_13] : memref<2x2048xf32, #tpu.memory_space<any>> -> memref<1x2048xf32, #tpu.memory_space<any>>
    %19 = tpu.memref_squeeze %18 : memref<1x2048xf32, #tpu.memory_space<any>> -> memref<2048xf32, #tpu.memory_space<any>>
    %c2048_i32_14 = arith.constant 2048 : i32
    %20 = tpu.memref_slice %arg2[%c1_i32_12, %c2048_i32_14] : memref<2x4096xf32, #tpu.memory_space<any>> -> memref<1x2048xf32, #tpu.memory_space<any>>
    %21 = tpu.memref_squeeze %20 : memref<1x2048xf32, #tpu.memory_space<any>> -> memref<2048xf32, #tpu.memory_space<any>>
    %22 = tpu.memref_slice %arg3[%c3_i32] : memref<4x!tpu.dma_semaphore, #tpu.memory_space<semaphore_mem>> -> memref<1x!tpu.dma_semaphore, #tpu.memory_space<semaphore_mem>>
    %23 = tpu.memref_squeeze %22 : memref<1x!tpu.dma_semaphore, #tpu.memory_space<semaphore_mem>> -> memref<!tpu.dma_semaphore, #tpu.memory_space<semaphore_mem>>
    tpu.enqueue_dma source(%19 : memref<2048xf32, #tpu.memory_space<any>>) target(%21 : memref<2048xf32, #tpu.memory_space<any>>) target_semaphore(%23 : memref<!tpu.dma_semaphore, #tpu.memory_space<semaphore_mem>>)
    %c0_i32_15 = arith.constant 0 : i32
    %c0_i32_16 = arith.constant 0 : i32
    %c0_i32_17 = arith.constant 0 : i32
    %c0_i32_18 = arith.constant 0 : i32
    %24 = tpu.memref_slice %arg0[%c0_i32_15, %c0_i32_18] : memref<2x2048xf32, #tpu.memory_space<any>> -> memref<1x2048xf32, #tpu.memory_space<any>>
    %25 = tpu.memref_squeeze %24 : memref<1x2048xf32, #tpu.memory_space<any>> -> memref<2048xf32, #tpu.memory_space<any>>
    %c0_i32_19 = arith.constant 0 : i32
    %26 = tpu.memref_slice %arg2[%c0_i32_16, %c0_i32_19] : memref<2x4096xf32, #tpu.memory_space<any>> -> memref<1x2048xf32, #tpu.memory_space<any>>
    %27 = tpu.memref_squeeze %26 : memref<1x2048xf32, #tpu.memory_space<any>> -> memref<2048xf32, #tpu.memory_space<any>>
    %28 = tpu.memref_slice %arg3[%c0_i32_17] : memref<4x!tpu.dma_semaphore, #tpu.memory_space<semaphore_mem>> -> memref<1x!tpu.dma_semaphore, #tpu.memory_space<semaphore_mem>>
    %29 = tpu.memref_squeeze %28 : memref<1x!tpu.dma_semaphore, #tpu.memory_space<semaphore_mem>> -> memref<!tpu.dma_semaphore, #tpu.memory_space<semaphore_mem>>
    tpu.wait_dma2 semaphore(%29 : memref<!tpu.dma_semaphore, #tpu.memory_space<semaphore_mem>>) src(%25 : memref<2048xf32, #tpu.memory_space<any>>) dst(%27 : memref<2048xf32, #tpu.memory_space<any>>)
    %c0_i32_20 = arith.constant 0 : i32
    %c0_i32_21 = arith.constant 0 : i32
    %c1_i32_22 = arith.constant 1 : i32
    %c0_i32_23 = arith.constant 0 : i32
    %30 = tpu.memref_slice %arg1[%c0_i32_20, %c0_i32_23] : memref<2x2048xf32, #tpu.memory_space<any>> -> memref<1x2048xf32, #tpu.memory_space<any>>
    %31 = tpu.memref_squeeze %30 : memref<1x2048xf32, #tpu.memory_space<any>> -> memref<2048xf32, #tpu.memory_space<any>>
    %c2048_i32_24 = arith.constant 2048 : i32
    %32 = tpu.memref_slice %arg2[%c0_i32_21, %c2048_i32_24] : memref<2x4096xf32, #tpu.memory_space<any>> -> memref<1x2048xf32, #tpu.memory_space<any>>
    %33 = tpu.memref_squeeze %32 : memref<1x2048xf32, #tpu.memory_space<any>> -> memref<2048xf32, #tpu.memory_space<any>>
    %34 = tpu.memref_slice %arg3[%c1_i32_22] : memref<4x!tpu.dma_semaphore, #tpu.memory_space<semaphore_mem>> -> memref<1x!tpu.dma_semaphore, #tpu.memory_space<semaphore_mem>>
    %35 = tpu.memref_squeeze %34 : memref<1x!tpu.dma_semaphore, #tpu.memory_space<semaphore_mem>> -> memref<!tpu.dma_semaphore, #tpu.memory_space<semaphore_mem>>
    tpu.wait_dma2 semaphore(%35 : memref<!tpu.dma_semaphore, #tpu.memory_space<semaphore_mem>>) src(%31 : memref<2048xf32, #tpu.memory_space<any>>) dst(%33 : memref<2048xf32, #tpu.memory_space<any>>)
    %c1_i32_25 = arith.constant 1 : i32
    %c1_i32_26 = arith.constant 1 : i32
    %c2_i32_27 = arith.constant 2 : i32
    %c0_i32_28 = arith.constant 0 : i32
    %36 = tpu.memref_slice %arg0[%c1_i32_25, %c0_i32_28] : memref<2x2048xf32, #tpu.memory_space<any>> -> memref<1x2048xf32, #tpu.memory_space<any>>
    %37 = tpu.memref_squeeze %36 : memref<1x2048xf32, #tpu.memory_space<any>> -> memref<2048xf32, #tpu.memory_space<any>>
    %c0_i32_29 = arith.constant 0 : i32
    %38 = tpu.memref_slice %arg2[%c1_i32_26, %c0_i32_29] : memref<2x4096xf32, #tpu.memory_space<any>> -> memref<1x2048xf32, #tpu.memory_space<any>>
    %39 = tpu.memref_squeeze %38 : memref<1x2048xf32, #tpu.memory_space<any>> -> memref<2048xf32, #tpu.memory_space<any>>
    %40 = tpu.memref_slice %arg3[%c2_i32_27] : memref<4x!tpu.dma_semaphore, #tpu.memory_space<semaphore_mem>> -> memref<1x!tpu.dma_semaphore, #tpu.memory_space<semaphore_mem>>
    %41 = tpu.memref_squeeze %40 : memref<1x!tpu.dma_semaphore, #tpu.memory_space<semaphore_mem>> -> memref<!tpu.dma_semaphore, #tpu.memory_space<semaphore_mem>>
    tpu.wait_dma2 semaphore(%41 : memref<!tpu.dma_semaphore, #tpu.memory_space<semaphore_mem>>) src(%37 : memref<2048xf32, #tpu.memory_space<any>>) dst(%39 : memref<2048xf32, #tpu.memory_space<any>>)
    %c1_i32_30 = arith.constant 1 : i32
    %c1_i32_31 = arith.constant 1 : i32
    %c3_i32_32 = arith.constant 3 : i32
    %c0_i32_33 = arith.constant 0 : i32
    %42 = tpu.memref_slice %arg1[%c1_i32_30, %c0_i32_33] : memref<2x2048xf32, #tpu.memory_space<any>> -> memref<1x2048xf32, #tpu.memory_space<any>>
    %43 = tpu.memref_squeeze %42 : memref<1x2048xf32, #tpu.memory_space<any>> -> memref<2048xf32, #tpu.memory_space<any>>
    %c2048_i32_34 = arith.constant 2048 : i32
    %44 = tpu.memref_slice %arg2[%c1_i32_31, %c2048_i32_34] : memref<2x4096xf32, #tpu.memory_space<any>> -> memref<1x2048xf32, #tpu.memory_space<any>>
    %45 = tpu.memref_squeeze %44 : memref<1x2048xf32, #tpu.memory_space<any>> -> memref<2048xf32, #tpu.memory_space<any>>
    %46 = tpu.memref_slice %arg3[%c3_i32_32] : memref<4x!tpu.dma_semaphore, #tpu.memory_space<semaphore_mem>> -> memref<1x!tpu.dma_semaphore, #tpu.memory_space<semaphore_mem>>
    %47 = tpu.memref_squeeze %46 : memref<1x!tpu.dma_semaphore, #tpu.memory_space<semaphore_mem>> -> memref<!tpu.dma_semaphore, #tpu.memory_space<semaphore_mem>>
    tpu.wait_dma2 semaphore(%47 : memref<!tpu.dma_semaphore, #tpu.memory_space<semaphore_mem>>) src(%43 : memref<2048xf32, #tpu.memory_space<any>>) dst(%45 : memref<2048xf32, #tpu.memory_space<any>>)
    return
  }
}

</mosaic_0001>

<bundles_post_ra>
// kernel: tpu_custom_call.1
= control target key start
LH: loop header
LB: loop body
LE: loop exit
PB: predicated region body
PF: predicated region fallthrough
CT: control target
= control target key end

     0   :  { %s149_s9 = smov 32   ;;  %s150_s10 = smov 1   ;;  %s199_s0 = inlined_call_operand.hbm [shape: f32[2,2048], index: 0, kind: input, shape index: {}]   ;;  %s200_s1 = inlined_call_operand.hbm [shape: f32[2,2048], index: 1, kind: input, shape index: {}]   ;;  %s201_s2 = inlined_call_operand.hbm [shape: f32[2,4096], index: 2, kind: output, shape index: {}]  }
   0x1   :  { %19 = sst [smem:[#allocation4]] %s149_s9  ;;  %s151_s11 = smov [#allocation2]  }
   0x2   :  { %21 = sst [smem:[#allocation4 + $0x1]] %s149_s9  ;;  %s152_s12 = smov [#allocation3]  }
   0x3   :  { %23 = sst [smem:[#allocation4 + $0x2]] %s150_s10  ;;  %s153_s13 = smov 0  }
   0x4   :  { %25 = dma.general %s199_s0, 256, %s201_s2, %s151_s11, %s152_s12, [#allocation4], %s153_s13, 0  }
   0x5   :  { %40 = sst [smem:[#allocation6]] %s149_s9  ;;  %s26_s20 = scalar_lea.hbm %s201_s2, 512 }
   0x6   :  { %42 = sst [smem:[#allocation6 + $0x1]] %s149_s9  ;;  %s154_s21 = smov [#allocation2 + $0x1]  }
   0x7   :  { %44 = sst [smem:[#allocation6 + $0x2]] %s150_s10  ;;  %s155_s22 = smov [#allocation5]  }
   0x8   :  { %46 = dma.general %s200_s1, 256, %s26_s20, %s154_s21, %s155_s22, [#allocation6], %s153_s13, 0  }
   0x9   :  { %62 = sst [smem:[#allocation8]] %s149_s9  ;;  %s47_s27 = scalar_lea.hbm %s199_s0, 16 }
   0xa   :  { %64 = sst [smem:[#allocation8 + $0x1]] %s149_s9  ;;  %s48_s30 = scalar_lea.hbm %s201_s2, 16 }
   0xb   :  { %66 = sst [smem:[#allocation8 + $0x2]] %s150_s10  ;;  %s69_s5 = scalar_lea.hbm %s200_s1, 16 }
   0xc   :  { %s156_s6 = smov [#allocation2 + $0x2]   ;;  %s157_s7 = smov [#allocation7]  }
   0xd   :  { %68 = dma.general %s47_s27, 256, %s48_s30, %s156_s6, %s157_s7, [#allocation8], %s153_s13, 0  }
   0xe   :  { %84 = sst [smem:[#allocation10]] %s149_s9  ;;  %s70_s12 = scalar_lea.hbm %s201_s2, 528 }
   0xf   :  { %86 = sst [smem:[#allocation10 + $0x1]] %s149_s9  ;;  %s158_s0 = smov [#allocation2 + $0x3]  }
  0x10   :  { %88 = sst [smem:[#allocation10 + $0x2]] %s150_s10  ;;  %s159_s14 = smov [#allocation9]  }
  0x11   :  { %90 = dma.general %s69_s5, 256, %s70_s12, %s158_s0, %s159_s14, [#allocation10], %s153_s13, 0  }
  0x12   :  { %141 = dma.done.wait [#allocation2], 256 }
  0x13   :  { %142 = vsyncadd [#allocation2], 4294967040 }
  0x14   :  { %143 = dma.done.wait [#allocation2 + $0x1], 256 }
  0x15   :  { %144 = vsyncadd [#allocation2 + $0x1], 4294967040 }
  0x16   :  { %145 = dma.done.wait [#allocation2 + $0x2], 256 }
  0x17   :  { %146 = vsyncadd [#allocation2 + $0x2], 4294967040 }
  0x18   :  { %147 = dma.done.wait [#allocation2 + $0x3], 256 }
  0x19   :  { %148 = vsyncadd [#allocation2 + $0x3], 4294967040 }
  0x1a   :  { %99 = vsyncmov [#allocation2] }
  0x1d   :  { %s100_s1 = vpop.sfrf %99 }
  0x1e   :  { %p126_p0 = scmp.ne.s32.totalorder %s100_s1, 0 }
  0x20   :  { %104 = shalt.err (%p126_p0)  }
  0x21   :  { %106 = vsyncmov [#allocation2 + $0x1] }
  0x24   :  { %s107_s15 = vpop.sfrf %106 }
  0x25   :  { %p127_p1 = scmp.ne.s32.totalorder %s107_s15, 0 }
  0x27   :  { %111 = shalt.err (%p127_p1)  }
  0x28   :  { %113 = vsyncmov [#allocation2 + $0x2] }
  0x2b   :  { %s114_s2 = vpop.sfrf %113 }
  0x2c   :  { %p128_p2 = scmp.ne.s32.totalorder %s114_s2, 0 }
  0x2e   :  { %118 = shalt.err (%p128_p2)  }
  0x2f   :  { %120 = vsyncmov [#allocation2 + $0x3] }
  0x32   :  { %s121_s9 = vpop.sfrf %120 }
  0x33   :  { %p129_p3 = scmp.ne.s32.totalorder %s121_s9, 0 }
  0x35   :  { %125 = shalt.err (%p129_p3)  }

</bundles_post_ra>
